<compile_context>
chip_gen: v7x
topology: tpu7x:2x2x1
jax: 0.10.0
libtpu: 0.0.40
codegen_flags: <defaults>
</compile_context>

<pallas_src>
import jax
import jax.numpy as jnp
from jax import lax
from jax.experimental import pallas as pl
from jax.experimental.pallas import tpu as pltpu

KSIZE = 3  # conv kernel size, padding = KSIZE // 2 = 1


def conv_block_kernel(x_ref, halo_ref, w_ref, bias_ref, o_ref, xcat_ref):
    """One (batch element, L-tile) per grid step.

    x_ref:    (1, C_in, TL)        input tile (channel-major, L on lanes)
    halo_ref: (1, nt, C_in, 2)     per-tile halo columns for this batch element
                                   [..., 0] = x[:, i*TL-1], [..., 1] = x[:, (i+1)*TL]
    w_ref:    (2*C_op, 3*C_in)     fused weights: rows [0, C_op) = BN-scaled conv
                                   taps, rows [C_op, 2*C_op) = residual 1x1 proj
    bias_ref: (2*C_op, 1)   f32    fused bias: [BN shift + conv bias ; residual bias]
    o_ref:    (1, C_op, TL)        output tile
    xcat_ref: (3*C_in, TL)  VMEM   scratch for the concatenated matmul operand
    """
    i = pl.program_id(1)
    xb = x_ref[0]                                   # (C_in, TL)
    c_in, tl = xb.shape
    c_op = w_ref.shape[0] // 2

    halo = halo_ref[0, i]                           # (C_in, 2)

    # Build the fused (3*C_in, TL) operand in VMEM:
    #   rows [0, C_in)        = x shifted right by 1   (x[l-1])
    #   rows [C_in, 2*C_in)   = x                      (x[l])
    #   rows [2*C_in, 3*C_in) = x shifted left by 1    (x[l+1])
    xcat_ref[c_in:2 * c_in, :] = xb
    xcat_ref[0:c_in, :] = pltpu.roll(xb, shift=1, axis=1)
    xcat_ref[2 * c_in:, :] = pltpu.roll(xb, shift=tl - 1, axis=1)
    # Patch the wrapped boundary columns with the cross-tile halo values
    # (zeros at the true sequence edges -> matches conv zero padding).
    xcat_ref[0:c_in, 0:1] = halo[:, 0:1]
    xcat_ref[2 * c_in:, tl - 1:tl] = halo[:, 1:2]

    # Single fused MXU matmul (K = 3*C_in) covering conv taps + residual proj,
    # f32 accumulation.
    acc = jnp.dot(w_ref[...], xcat_ref[...], preferred_element_type=jnp.float32)
    acc = acc + bias_ref[...]                       # (2*C_op, TL)

    # Top half: conv + BN(eval) -> ReLU.  Bottom half: residual projection.
    # TODO(synk): training-mode BN (batch stats) and stochastic dropout are not
    # implemented; dropout is identity in eval mode.
    o_ref[0] = (jnp.maximum(acc[:c_op], 0.0) + acc[c_op:]).astype(o_ref.dtype)


def conv_block(x_ncl, w_oik, b, gamma, beta, run_mean, run_var,
               wres_oi, bres, eps=1e-5, compute_dtype=jnp.bfloat16,
               out_dtype=jnp.float32, max_tile=1024):
    """x_ncl: (N, C_in, L) float32 (PyTorch NCL layout). Returns (N, C_out, L).

    When in_channels == out_channels the PyTorch module uses an Identity
    residual; pass wres_oi = identity matrix and bres = zeros for that case.
    """
    N, C_in, L = x_ncl.shape
    C_out, C_in_w, K = w_oik.shape
    assert K == KSIZE and C_in_w == C_in

    in_item = jnp.dtype(compute_dtype).itemsize
    out_item = jnp.dtype(out_dtype).itemsize

    # L padded to a multiple of 128 (lane-dense tiles, no TL = L fallback);
    # C_out padded to a multiple of 8 (unmasked sublane stores).
    L_pad = ((L + 127) // 128) * 128
    C_op = ((C_out + 7) // 8) * 8

    # Pick the biggest L tile under a conservative per-step VMEM budget
    # (double-buffered x & out tiles + the xcat scratch); safe for v7x 64 MiB.
    TL = 128
    budget = 20 * 1024 * 1024
    for cand in (2048, 1024, 512, 256, 128):
        if cand > max_tile or L_pad % cand != 0:
            continue
        est = cand * (2 * C_in * in_item + 2 * C_op * out_item
                      + 3 * C_in * in_item)
        if est <= budget:
            TL = cand
            break
    nt = L_pad // TL

    # ---- fold BN(eval) into the conv weights / bias and fuse taps + residual.
    scale = gamma / jnp.sqrt(run_var + eps)                       # (C_out,)
    shift = beta - run_mean * scale + b * scale                   # (C_out,)

    # (C_out, C_in, K) -> (C_out, K*C_in): column k*C_in + c multiplies the
    # tap-k-shifted channel c, matching the xcat row order in the kernel.
    w_conv = jnp.transpose(w_oik, (0, 2, 1)).reshape(C_out, K * C_in)
    w_conv = w_conv * scale[:, None]
    zeros = jnp.zeros((C_out, C_in), jnp.float32)
    w_res = jnp.concatenate([zeros, wres_oi, zeros], axis=1)      # acts on x[l]

    pad_r = C_op - C_out
    w_big = jnp.concatenate(
        [jnp.pad(w_conv, ((0, pad_r), (0, 0))),
         jnp.pad(w_res, ((0, pad_r), (0, 0)))], axis=0).astype(compute_dtype)
    bias_big = jnp.concatenate(
        [jnp.pad(shift, (0, pad_r)), jnp.pad(bres, (0, pad_r))]
    ).reshape(2 * C_op, 1).astype(jnp.float32)

    # ---- input cast + L padding.
    xc = x_ncl.astype(compute_dtype)
    if L_pad != L:
        xc = jnp.pad(xc, ((0, 0), (0, 0), (0, L_pad - L)))

    # ---- per-tile halo columns, one resident block per batch element.
    # halo[n, i, :, 0] = x[n, :, i*TL - 1]   (zero at the left sequence edge)
    # halo[n, i, :, 1] = x[n, :, (i+1)*TL]   (zero at the right sequence edge)
    zero_col = jnp.zeros((N, C_in, 1), compute_dtype)
    lh = jnp.concatenate([zero_col, xc[:, :, TL - 1:L_pad - 1:TL]], axis=2)
    rh = jnp.concatenate([xc[:, :, TL:L_pad:TL], zero_col], axis=2)
    halo = jnp.stack([lh, rh], axis=-1)                           # (N, C_in, nt, 2)
    halo = jnp.transpose(halo, (0, 2, 1, 3))                      # (N, nt, C_in, 2)

    cost = pl.CostEstimate(
        flops=2 * N * L_pad * (2 * C_op) * (3 * C_in),
        transcendentals=0,
        bytes_accessed=(N * C_in * L_pad * in_item                # x
                        + N * C_op * L_pad * out_item             # out
                        + N * nt * C_in * 2 * in_item             # halos
                        + 2 * C_op * 3 * C_in * in_item           # fused weights
                        + 2 * C_op * 4))                          # fused bias

    out = pl.pallas_call(
        conv_block_kernel,
        out_shape=jax.ShapeDtypeStruct((N, C_op, L_pad), out_dtype),
        grid_spec=pltpu.PrefetchScalarGridSpec(
            num_scalar_prefetch=0,
            grid=(N, nt),
            in_specs=[
                pl.BlockSpec((1, C_in, TL), lambda n, i: (n, 0, i)),        # x tile
                pl.BlockSpec((1, nt, C_in, 2), lambda n, i: (n, 0, 0, 0)),  # halos
                pl.BlockSpec((2 * C_op, 3 * C_in), lambda n, i: (0, 0)),    # weights
                pl.BlockSpec((2 * C_op, 1), lambda n, i: (0, 0)),           # bias
            ],
            out_specs=pl.BlockSpec((1, C_op, TL), lambda n, i: (n, 0, i)),
            scratch_shapes=[pltpu.VMEM((3 * C_in, TL), compute_dtype)],
        ),
        compiler_params=pltpu.CompilerParams(
            dimension_semantics=("parallel", "parallel"),
            vmem_limit_bytes=48 * 1024 * 1024),
        cost_estimate=cost,
    )(xc, halo, w_big, bias_big)

    if C_op != C_out or L_pad != L:
        out = out[:, :C_out, :L]
    return out


def reference(x_ncl, w_oik, b, gamma, beta, run_mean, run_var,
              wres_oi, bres, eps=1e-5):
    """Pure-JAX reference mirroring the PyTorch eval-mode forward."""
    conv = lax.conv_general_dilated(
        x_ncl, w_oik, window_strides=(1,), padding=((1, 1),),
        dimension_numbers=('NCH', 'OIH', 'NCH')) + b[None, :, None]
    bn = (conv - run_mean[None, :, None]) / jnp.sqrt(run_var[None, :, None] + eps)
    bn = bn * gamma[None, :, None] + beta[None, :, None]
    act = jnp.maximum(bn, 0.0)
    res = lax.conv_general_dilated(
        x_ncl, wres_oi[:, :, None], window_strides=(1,), padding=((0, 0),),
        dimension_numbers=('NCH', 'OIH', 'NCH')) + bres[None, :, None]
    return act + res


def _make_params(key, N, C_in, C_out, L):
    ks = jax.random.split(key, 9)
    x = jax.random.normal(ks[0], (N, C_in, L), jnp.float32)
    w = jax.random.normal(ks[1], (C_out, C_in, KSIZE), jnp.float32) * 0.2
    b = jax.random.normal(ks[2], (C_out,), jnp.float32) * 0.1
    gamma = 1.0 + 0.1 * jax.random.normal(ks[3], (C_out,), jnp.float32)
    beta = 0.1 * jax.random.normal(ks[4], (C_out,), jnp.float32)
    run_mean = 0.1 * jax.random.normal(ks[5], (C_out,), jnp.float32)
    run_var = 1.0 + 0.2 * jax.random.uniform(ks[6], (C_out,), jnp.float32)
    wres = jax.random.normal(ks[7], (C_out, C_in), jnp.float32) * 0.3
    bres = jax.random.normal(ks[8], (C_out,), jnp.float32) * 0.1
    return x, w, b, gamma, beta, run_mean, run_var, wres, bres


if __name__ == "__main__":
    key = jax.random.PRNGKey(0)
    k1, k2 = jax.random.split(key)

    # Test 1: tiny demo shapes (L padded 16 -> 128 internally, single tile),
    # f32 compute path.  Tolerance allows for possible bf16 MXU passes at
    # default f32 matmul precision while still catching structural errors.
    args1 = _make_params(k1, 2, 4, 8, 16)
    out1 = jax.block_until_ready(
        conv_block(*args1, compute_dtype=jnp.float32, out_dtype=jnp.float32))
    ref1 = reference(*args1)
    assert out1.shape == (2, 8, 16)
    assert jnp.allclose(out1, ref1, atol=2e-2, rtol=2e-2), "f32 mismatch vs reference"

    # Test 2: tiled L (grid=(2, 2)) exercising the cross-tile halo path with
    # bf16 MXU operands (f32 accumulation), f32 output.
    args2 = _make_params(k2, 2, 16, 32, 256)
    out2 = jax.block_until_ready(
        conv_block(*args2, compute_dtype=jnp.bfloat16, out_dtype=jnp.float32,
                   max_tile=128))
    ref2 = reference(*args2)
    assert out2.shape == (2, 32, 256)
    assert jnp.allclose(out2, ref2, atol=5e-2, rtol=5e-2), "bf16 mismatch vs reference"

    # Test 3: default tiling (TL=256, single tile) with a bf16 output stream
    # (halves the dominant HBM writeback); relaxed tolerance for the bf16 store.
    out3 = jax.block_until_ready(
        conv_block(*args2, compute_dtype=jnp.bfloat16, out_dtype=jnp.bfloat16))
    assert out3.shape == (2, 32, 256)
    assert jnp.allclose(out3.astype(jnp.float32), ref2, atol=1e-1, rtol=1e-1), \
        "bf16-out mismatch vs reference"

    print("KERNEL_OK")
</pallas_src>

<mosaic_0001>
module attributes {stable_mosaic.version = 11 : i64} {
  func.func @conv_block_kernel(%arg0: i32, %arg1: i32, %arg2: memref<1x4x128xf32, #tpu.memory_space<vmem>>, %arg3: memref<1x1x4x2xf32, #tpu.memory_space<vmem>>, %arg4: memref<16x12xf32, #tpu.memory_space<vmem>>, %arg5: memref<16x1xf32, #tpu.memory_space<vmem>>, %arg6: memref<1x8x128xf32, #tpu.memory_space<vmem>>, %arg7: memref<12x128xf32, #tpu.memory_space<vmem>>) attributes {dimension_semantics = [#tpu.dimension_semantics<parallel>, #tpu.dimension_semantics<parallel>], iteration_bounds = array<i64: 2, 1>, scalar_prefetch = 0 : i64, scratch_operands = 1 : i64, tpu.core_type = #tpu.core_type<tc>, window_params = [{transform_indices = @transform_0, window_bounds = array<i64: 1, 4, 128>}, {transform_indices = @transform_1, window_bounds = array<i64: 1, 1, 4, 2>}, {pipeline_mode = #tpu.pipeline_mode<synchronous>, transform_indices = @transform_2, window_bounds = array<i64: 16, 12>}, {pipeline_mode = #tpu.pipeline_mode<synchronous>, transform_indices = @transform_3, window_bounds = array<i64: 16, 1>}, {transform_indices = @transform_4, window_bounds = array<i64: 1, 8, 128>}]} {
    %c0 = arith.constant 0 : index
    %c0_0 = arith.constant 0 : index
    %c0_1 = arith.constant 0 : index
    %0 = vector.load %arg2[%c0, %c0_0, %c0_1] : memref<1x4x128xf32, #tpu.memory_space<vmem>>, vector<1x4x128xf32>
    %1 = vector.shape_cast %0 : vector<1x4x128xf32> to vector<4x128xf32>
    %c0_2 = arith.constant 0 : index
    %2 = arith.index_cast %arg1 : i32 to index
    %c0_3 = arith.constant 0 : index
    %c0_4 = arith.constant 0 : index
    %3 = vector.load %arg3[%c0_2, %2, %c0_3, %c0_4] : memref<1x1x4x2xf32, #tpu.memory_space<vmem>>, vector<1x1x4x2xf32>
    %4 = vector.shape_cast %3 : vector<1x1x4x2xf32> to vector<4x2xf32>
    %c4 = arith.constant 4 : index
    %c0_5 = arith.constant 0 : index
    %5 = vector.load %arg7[%c4, %c0_5] : memref<12x128xf32, #tpu.memory_space<vmem>>, vector<4x128xf32>
    tpu.vector_store %arg7[%c4, %c0_5], %1 {strides = array<i32>} : memref<12x128xf32, #tpu.memory_space<vmem>>, vector<4x128xf32>,
    %c1_i32 = arith.constant 1 : i32
    %6 = tpu.dynamic_rotate %1 by %c1_i32 dim 1 : vector<4x128xf32>, i32 -> vector<4x128xf32>
    %c0_6 = arith.constant 0 : index
    %c0_7 = arith.constant 0 : index
    %7 = vector.load %arg7[%c0_6, %c0_7] : memref<12x128xf32, #tpu.memory_space<vmem>>, vector<4x128xf32>
    tpu.vector_store %arg7[%c0_6, %c0_7], %6 {strides = array<i32>} : memref<12x128xf32, #tpu.memory_space<vmem>>, vector<4x128xf32>,
    %c127_i32 = arith.constant 127 : i32
    %8 = tpu.dynamic_rotate %1 by %c127_i32 dim 1 : vector<4x128xf32>, i32 -> vector<4x128xf32>
    %c8 = arith.constant 8 : index
    %c0_8 = arith.constant 0 : index
    %9 = vector.load %arg7[%c8, %c0_8] : memref<12x128xf32, #tpu.memory_space<vmem>>, vector<4x128xf32>
    tpu.vector_store %arg7[%c8, %c0_8], %8 {strides = array<i32>} : memref<12x128xf32, #tpu.memory_space<vmem>>, vector<4x128xf32>,
    %10 = vector.extract_strided_slice %4 {offsets = [0, 0], sizes = [4, 1], strides = [1, 1]} : vector<4x2xf32> to vector<4x1xf32>
    %c0_9 = arith.constant 0 : index
    %c0_10 = arith.constant 0 : index
    %11 = vector.load %arg7[%c0_9, %c0_10] : memref<12x128xf32, #tpu.memory_space<vmem>>, vector<4x1xf32>
    tpu.vector_store %arg7[%c0_9, %c0_10], %10 {strides = array<i32>} : memref<12x128xf32, #tpu.memory_space<vmem>>, vector<4x1xf32>,
    %12 = vector.extract_strided_slice %4 {offsets = [0, 1], sizes = [4, 1], strides = [1, 1]} : vector<4x2xf32> to vector<4x1xf32>
    %c8_11 = arith.constant 8 : index
    %c127 = arith.constant 127 : index
    %13 = vector.load %arg7[%c8_11, %c127] : memref<12x128xf32, #tpu.memory_space<vmem>>, vector<4x1xf32>
    tpu.vector_store %arg7[%c8_11, %c127], %12 {strides = array<i32>} : memref<12x128xf32, #tpu.memory_space<vmem>>, vector<4x1xf32>,
    %c0_12 = arith.constant 0 : index
    %c0_13 = arith.constant 0 : index
    %14 = vector.load %arg4[%c0_12, %c0_13] : memref<16x12xf32, #tpu.memory_space<vmem>>, vector<16x12xf32>
    %c0_14 = arith.constant 0 : index
    %c0_15 = arith.constant 0 : index
    %15 = vector.load %arg7[%c0_14, %c0_15] : memref<12x128xf32, #tpu.memory_space<vmem>>, vector<12x128xf32>
    %cst = arith.constant dense<0.000000e+00> : vector<16x128xf32>
    %16 = tpu.matmul %14, %15, %cst {dimension_numbers = #tpu.dot_dimension_numbers<[1], [0], [0], [1], [0, 0, 1, 1], [], []>} : vector<16x12xf32>, vector<12x128xf32>, vector<16x128xf32> -> vector<16x128xf32>
    %c0_16 = arith.constant 0 : index
    %c0_17 = arith.constant 0 : index
    %17 = vector.load %arg5[%c0_16, %c0_17] : memref<16x1xf32, #tpu.memory_space<vmem>>, vector<16x1xf32>
    %18 = vector.broadcast %17 : vector<16x1xf32> to vector<16x128xf32>
    %19 = arith.addf %16, %18 : vector<16x128xf32>
    %20 = vector.extract_strided_slice %19 {offsets = [0, 0], sizes = [8, 128], strides = [1, 1]} : vector<16x128xf32> to vector<8x128xf32>
    %cst_18 = arith.constant 0.000000e+00 : f32
    %21 = vector.broadcast %cst_18 : f32 to vector<8x128xf32>
    %22 = arith.maximumf %20, %21 : vector<8x128xf32>
    %23 = vector.extract_strided_slice %19 {offsets = [8, 0], sizes = [8, 128], strides = [1, 1]} : vector<16x128xf32> to vector<8x128xf32>
    %24 = arith.addf %22, %23 : vector<8x128xf32>
    %c0_19 = arith.constant 0 : index
    %c0_20 = arith.constant 0 : index
    %c0_21 = arith.constant 0 : index
    %25 = vector.load %arg6[%c0_19, %c0_20, %c0_21] : memref<1x8x128xf32, #tpu.memory_space<vmem>>, vector<1x8x128xf32>
    %26 = vector.shape_cast %25 : vector<1x8x128xf32> to vector<8x128xf32>
    %27 = vector.shape_cast %24 : vector<8x128xf32> to vector<1x8x128xf32>
    tpu.vector_store %arg6[%c0_19, %c0_20, %c0_21], %27 {strides = array<i32>} : memref<1x8x128xf32, #tpu.memory_space<vmem>>, vector<1x8x128xf32>,
    return
  }
  func.func @transform_0(%arg0: i32, %arg1: i32) -> (i32, i32, i32) {
    %c0_i32 = arith.constant 0 : i32
    %c0_i32_0 = arith.constant 0 : i32
    return %arg0, %c0_i32, %arg1 : i32, i32, i32
  }
  func.func @transform_1(%arg0: i32, %arg1: i32) -> (i32, i32, i32, i32) {
    %c0_i32 = arith.constant 0 : i32
    %c0_i32_0 = arith.constant 0 : i32
    %c0_i32_1 = arith.constant 0 : i32
    %c0_i32_2 = arith.constant 0 : i32
    return %arg0, %c0_i32, %c0_i32_0, %c0_i32_1 : i32, i32, i32, i32
  }
  func.func @transform_2(%arg0: i32, %arg1: i32) -> (i32, i32) {
    %c0_i32 = arith.constant 0 : i32
    %c0_i32_0 = arith.constant 0 : i32
    %c0_i32_1 = arith.constant 0 : i32
    return %c0_i32, %c0_i32_0 : i32, i32
  }
  func.func @transform_3(%arg0: i32, %arg1: i32) -> (i32, i32) {
    %c0_i32 = arith.constant 0 : i32
    %c0_i32_0 = arith.constant 0 : i32
    %c0_i32_1 = arith.constant 0 : i32
    return %c0_i32, %c0_i32_0 : i32, i32
  }
  func.func @transform_4(%arg0: i32, %arg1: i32) -> (i32, i32, i32) {
    %c0_i32 = arith.constant 0 : i32
    %c0_i32_0 = arith.constant 0 : i32
    return %arg0, %c0_i32, %arg1 : i32, i32, i32
  }
}

</mosaic_0001>

<bundles_post_ra>
// kernel: tpu_custom_call.1
= control target key start
LH: loop header
LB: loop body
LE: loop exit
PB: predicated region body
PF: predicated region fallthrough
CT: control target
= control target key end

     0   :  { %9 = vsyncpa [#allocation4], 0  ;;  %s793_s0 = inlined_call_operand.vmem [shape: f32[2,4,128], index: 0, kind: input, shape index: {}]   ;;  %s794_s1 = inlined_call_operand.vmem [shape: f32[2,1,4,2], index: 1, kind: input, shape index: {}]   ;;  %s795_s2 = inlined_call_operand.vmem [shape: f32[16,12], index: 2, kind: input, shape index: {}]   ;;  %s796_s3 = inlined_call_operand.vmem [shape: f32[16,1], index: 3, kind: input, shape index: {}]   ;;  %s797_s4 = inlined_call_operand.hbm [shape: f32[2,8,128], index: 4, kind: output, shape index: {}]  }
   0x1   :  { %11 = vsyncpa [#allocation4 + $0x1], 0  ;;  %s664_s15 = smov 0   ;;  %s666_s16 = smov 0  }
   0x2   :  { %s668_s17 = smov 0   ;;  %s670_s18 = smov 0  }
   0x3   :  { %s672_s19 = smov 0   ;;  %s674_s20 = smov 0  }
   0x4 LB: > { %s459_s21 = sadd.s32 4294967295, %s631_s20   ;;  %s460_s22 = sadd.s32 4294967294, %s631_s20   ;;  %s631_s20 = sphi %s674_s20, %s17_s20   ;;  %s627_s19 = sphi %s672_s19, %s804_s19   ;;  %s623_s18 = sphi %s670_s18, %s803_s18   ;;  %s619_s17 = sphi %s668_s17, %s802_s17   ;;  %s615_s16 = sphi %s666_s16, %s801_s16   ;;  %s611_s15 = sphi %s664_s15, %s800_s15  }
   0x5   : > { %s29_s23 = sadd.s32 1, %s627_s19  ;;  %s134_s24 = sadd.s32 1, %s619_s17 }
   0x6   : > { %p31_p0 = scmp.ge.s32.totalorder %s29_s23, 2  ;;  %p144_p1 = scmp.ne.s32.totalorder %s619_s17, %s615_s16 }
   0x7   : > { %p145_p2 = scmp.eq.s32.totalorder %s459_s21, 1  ;;  %p150_p3 = scmp.ne.s32.totalorder %s615_s16, %s611_s15 }
   0x8   : > { %s806_s23 = smov (%p31_p0, %s29_s23), 0  ;;  %p151_p5 = scmp.eq.s32.totalorder %s460_s22, 1 }
   0x9   : > { %p704_p4 = por %p145_p2, %p144_p1  ;;  %s129_s26 = ssub.s32 %s627_s19, %s806_s23 }
   0xa   : > { %p463_p6 = scmp.ge.s32.totalorder %s631_s20, 1  ;;  %p132_p7 = scmp.eq.s32.totalorder %s129_s26, 0 }
   0xb   : > { %p711_p8 = por %p151_p5, %p150_p3  ;;  %p192_p9 = scmp.lt.s32.totalorder %s631_s20, 3 }
   0xc   : > { %s717_s28 = scalar_select %p132_p7, %s619_s17, %s134_s24  }
   0xd   : > { %p193_p10 = pnand %p463_p6, %p192_p9 }
   0xe   : > { %p224_p11 = scmp.lt.s32.totalorder (!%p193_p10), %s623_s18, 1  ;;  %s633_s11 = smov (!%p193_p10), 1   ;;  %v254_v2 = vld [vmem:[%s795_s2] sm:$0xff] (!%p193_p10)  ;;  %vm270_vm0 = vcmask (!%p193_p10), 97280   ;;  %v259_v3 = vld [vmem:[%s796_s3 + $0x8] sm:$0xff] (!%p193_p10)  ;;  %v636_v5 = vmov (!%p193_p10), 0  }
   0xf   : > { %196 = sbr.rel (%p193_p10) target bundleno = 394 (0x18a), region = 36  ;;  %s634_s12 = smov (!%p193_p10), 126   ;;  %482 = vmatprep.mubr.msk.f32.mxu0 (!%p193_p10), %vm270_vm0, %v254_v2  ;;  %v258_v4 = vld [vmem:[%s796_s3] sm:$0xff] (!%p193_p10)  ;;  %552 = vset.pattern.permute.xlu0 (!%p193_p10), %v636_v5  ;;  %vm246_vm1 = vcmask (!%p193_p10), 3072   ;;  %vm252_vm2 = vcmask (!%p193_p10), 1044472   ;;  %vm277_vm3 = vcmask (!%p193_p10), 1043456  }
  0x10   : > { %s635_s21 = smov (!%p193_p10), 127   ;;  %551 = vset.pattern.permute.xlu1 (!%p193_p10), %v636_v5  ;;  %vm637_vm4 = vmmov (!%p193_p10), 1   ;;  %v255_v12 = vld [vmem:[%s795_s2 + $0x8] sm:$0xff] (!%p193_p10)  ;;  %s221_s6 = sand.u32 (!%p193_p10), 1, %s615_s16  }
  0x11   : > { %vm486_vm5 = vmpackc.low (!%p193_p10), %vm277_vm3, %vm637_vm4  ;;  %s471_s8 = sshll.u32 (!%p193_p10), %s623_s18, 7  ;;  %s360_s14 = scalar_lea.sflag (!%p193_p10), [#allocation4], %s221_s6 }
  0x12   : > { %s746_s13 = scalar_lea.hbm (!%p193_p10), %s797_s4, %s471_s8 }
  0x16   : > { %s225_s29 = scalar_select %p224_p11, %s623_s18, 1 }
  0x17   : > { %s638_s18 = smov [#allocation3]  }
  0x18   : > { %s465_s30 = sshll.u32 %s225_s29, 2  ;;  %s557_s22 = sshll.u32 %s638_s18, 4  ;;  %s558_s22 = int_to_ptr.vmem [resolvable:$false] %s557_s22 }
  0x19   : > { %s230_s7 = scalar_lea.vmem %s793_s0, %s465_s30  ;;  %s234_s10 = scalar_lea.vmem %s794_s1, %s465_s30 }
  0x1a   : > { %v235_v0 = vld [vmem:[%s230_s7] sm:$0xf]  ;;  %s464_s7 = sshll.u32 %s221_s6, 3  ;;  %s559_s24 = scalar_lea.vmem %s558_s22, 256 }
  0x1b   : > { %v238_v1 = vld [vmem:[%s234_s10] sm:$0xf]  ;;  %240 = vrot.lane.b32.xlu0 %v235_v0, %s633_s11  ;;  %239 = vst [vmem:[#allocation2 + $0x4] sm:$0xf] %v235_v0  ;;  %s223_s9 = scalar_lea.vmem [#allocation3], %s464_s7 }
  0x1c   : > { %249 = vrot.lane.b32.xlu1 %v238_v1, %s634_s12  ;;  %s374_s10 = sshll.u32 %s223_s9, 4  ;;  %s748_s10 = int_to_ptr.vmem [resolvable:$true] %s374_s10 }
  0x1d   : > { %p560_p1 = scmp.lt.s32.totalorder %s748_s10, %s558_s22 }
  0x1f   : > { %243 = vrot.lane.b32.xlu0 %v235_v0, %s635_s21  ;;  %s553_s21 = scalar_lea.vmem %s748_s10, 128 }
  0x20   : > { %262 = vperm.xlu1 %551, %v258_v4   ;;  %p554_p12 = scmp.ne.s32.totalorder %s748_s10, %s553_s21  ;;  %p561_p2 = scmp.lt.s32.totalorder %s559_s24, %s553_s21 }
  0x22   : > { %p555_p13 = pnand %p554_p12, %p704_p4  ;;  %p562_p3 = por %p561_p2, %p560_p1 }
  0x23   : > { %267 = vperm.xlu0 %552, %v259_v3  }
  0x24   : > { %p556_p0 = pneg %p555_p13 }
  0x26   : > { %p563_p5 = pnand %p562_p3, %p556_p0 }
  0x8d   : > { %v241_v6 = vpop.permute.xlu0 %240 }
  0x8e   : > { %242 = vst [vmem:[#allocation2] sm:$0xf] %v241_v6  ;;  %v250_v7 = vpop.permute.xlu1 %249 }
  0x8f   : > { %247 = vst.msk [vmem:[#allocation2] sm:$0xf] %vm246_vm1, %v238_v1 }
  0x91   : > { %v244_v8 = vpop.permute.xlu0 %243 }
  0x92   : > { %245 = vst [vmem:[#allocation2 + $0x8] sm:$0xf] %v244_v8 }
  0x93   : > { %253 = vst.msk [vmem:[#allocation2 + $0x8] sm:$0xf] %vm252_vm2, %v250_v7 }
  0x96   : > { %v256_v9 = vld [vmem:[#allocation2] sm:$0xff] }
  0x9a   : > { %v257_v10 = vld [vmem:[#allocation2 + $0x8] sm:$0xf] }
  0x9b   : > { %v485_v11 = vpack.c.bf16 %v257_v10, %v256_v9 }
  0x9d   : > { %487 = vmatprep.subr.msk.bf16.mxu0 %vm486_vm5, %v485_v11 }
  0x9e   : > { %490 = vmatpush3.bf16.msk.msra.mxu0 %vm486_vm5, %v485_v11 }
  0x9f   : > { %v263_v13 = vpop.permute.xlu1 %262 }
  0xa1   : > { %483 = vmatmul.mubr.msk.f32.vlgmr.msra.gmra.mrb[0].mxu0 %vm270_vm0, %v255_v12 }
  0xa2   : > { %v268_v15 = vpop.permute.xlu0 %267 }
 0x174   : > { %v484_v14 = vpop.f32.mrb[0].mxu0 }
 0x175   : > { %v347_v16 = vpop.f32.mrb[1].mxu0  ;;  %v353_v18 = vadd.f32 %v484_v14, %v268_v15 }
 0x176   : > { %v348_v17 = vadd.f32 %v347_v16, %v263_v13 }
 0x178   : > { %v356_v19 = vmax.f32 %v348_v17, 0.0 }
 0x17a   : > { %v357_v20 = vadd.f32 %v356_v19, %v353_v18 }
 0x17c   : > { %358 = vst [vmem:[%s223_s9] sm:$0xff] %v357_v20 }
 0x17d   : > { %566 = shalt.err (!%p563_p5)
}
 0x17e   : > { %s567_s26 = scalar_lea.hbm %s746_s13, 128  ;;  %s571_s5 = scalar_lea.hbm %s797_s4, 256 }
 0x17f   : > { %p568_p6 = scmp.ne.s32.totalorder %s746_s13, %s567_s26  ;;  %p572_p10 = scmp.lt.u32.totalorder %s746_s13, %s797_s4 }
 0x180   : > { %p573_p11 = scmp.lt.u32.totalorder %s571_s5, %s567_s26  ;;  %p575_p13 = scmp.lt.u32.totalorder %s567_s26, %s746_s13 }
 0x181   : > { %p569_p7 = pnand %p568_p6, %p704_p4 }
 0x182   : > { %p574_p12 = por %p573_p11, %p572_p10 }
 0x183   : > { %p570_p9 = pneg %p569_p7 }
 0x184   : > { %p576_p0 = por %p575_p13, %p574_p12 }
 0x186   : > { %p577_p1 = pnand %p576_p0, %p570_p9 }
 0x188   : > { %580 = shalt.err (!%p577_p1)
}
 0x189   : > { %491 = dma.vmem_to_hbm [thread:$0]  (%p704_p4), %s748_s10, 128, %s746_s13, %s360_s14  }
 0x18a PF: > { %p497_p2 = scmp.ge.s32.totalorder %s631_s20, 2  ;;  %s386_s8 = sand.u32 1, %s611_s15  }
 0x18b   : > { %s387_s9 = scalar_lea.sflag [#allocation4], %s386_s8 }
 0x18c   : > { %p494_p3 = pnand %p497_p2, %p711_p8 }
 0x18e   : > { %606 = dma.done.wait (!%p494_p3), %s387_s9, 128  }
 0x18f   : > { %608 = vsyncadd (!%p494_p3), %s387_s9, 4294967168  ;;  %s17_s20 = sadd.s32 1, %s631_s20   ;;  %s800_s15 = smov %s615_s16 }
 0x190   : > { %p14_p5 = scmp.ge.s32.totalorder %s17_s20, 4   ;;  %s801_s16 = smov %s619_s17 }
 0x191   : > { %s802_s17 = smov %s717_s28  ;;  %s803_s18 = smov %s627_s19 }
 0x192   : > { %s804_s19 = smov %s806_s23  ;;  %16 = sbr.rel (!%p14_p5) target bundleno = 4 (0x4), region = 75 }
 0x199   :  { %392 = vsyncpa [#allocation4], 1 }
 0x19a   :  { %394 = vsyncpa [#allocation4 + $0x1], 1 }

</bundles_post_ra>
